<compile_context>
chip_gen: v5e
topology: v5e:2x2
jax: 0.10.0
libtpu: 0.0.40
codegen_flags: <defaults>
</compile_context>

<pallas_src>
import jax
import jax.numpy as jnp
from jax.experimental import pallas as pl
from jax.experimental.pallas import tpu as pltpu


# --------------------------------------------------------------------------- #
# Kernel
# --------------------------------------------------------------------------- #
def _make_gcn_layer_kernel(tk, feat_resident, apply_relu):
    """Kernel computing  o = act((A @ F) @ W + b).

    Grid = (row blocks, reduction blocks).  The f32 VMEM accumulator holds
    A @ F; the tiny feature transform + bias (+ ReLU) run once in the
    k == last epilogue, entirely in f32 (no accumulator downcast).
    """

    def kernel(a_ref, f_ref, w_ref, b_ref, o_ref, acc_ref):
        k = pl.program_id(1)

        @pl.when(k == 0)
        def _():
            acc_ref[...] = jnp.zeros_like(acc_ref)

        if feat_resident:
            # F is fully VMEM-resident; slice the k-th reduction chunk.
            start = pl.multiple_of(k * tk, tk)
            f_tile = f_ref[pl.ds(start, tk), :]
        else:
            f_tile = f_ref[...]

        acc_ref[...] += jnp.dot(a_ref[...], f_tile,
                                preferred_element_type=jnp.float32)

        @pl.when(k == pl.num_programs(1) - 1)
        def _():
            out = jnp.dot(acc_ref[...], w_ref[...],
                          preferred_element_type=jnp.float32) + b_ref[...]
            if apply_relu:
                out = jnp.maximum(out, 0.0)
            o_ref[...] = out.astype(o_ref.dtype)

    return kernel


# --------------------------------------------------------------------------- #
# Tiling / VMEM planning
# --------------------------------------------------------------------------- #
_FEAT_RESIDENT_BYTES = 8 << 20      # keep X / H VMEM-resident if <= 8 MiB
_A_DOUBLE_BUF_BYTES = 24 << 20      # v7x-safe Â double-buffer budget


def _round_up(x, m):
    return -(-x // m) * m


def _plan_tiles(n, tile_m, tile_k, itemsize):
    """Row/reduction tiles and per-axis padded node counts."""
    tm = tile_m if tile_m is not None else 512
    tk = tile_k if tile_k is not None else 1024
    tm = max(8, _round_up(min(tm, n), 8))
    tk = max(128, _round_up(min(tk, n), 128))

    # Cap the Â double buffer so the tile plan fits v7x's 64 MiB VMEM.
    while 2 * tm * tk * itemsize > _A_DOUBLE_BUF_BYTES and tk > 128:
        tk = max(128, _round_up(tk // 2, 128))
    while 2 * tm * tk * itemsize > _A_DOUBLE_BUF_BYTES and tm > 8:
        tm = max(8, _round_up(tm // 2, 8))

    # v7x megacore: make sure there are >= 2 row blocks so both TCs get work.
    if _round_up(n, tm) // tm < 2 and n > 8:
        tm = max(8, _round_up(-(-n // 2), 8))

    n_pad_m = _round_up(n, tm)      # rows padded to a multiple of tm
    n_pad_k = _round_up(n, tk)      # reduction/cols padded to a multiple of tk
    return tm, tk, n_pad_m, n_pad_k


def _vmem_need(tm, tk, feat_rows, feat_cols, w_out, cd, out_itemsize,
               feat_resident):
    a_buf = 2 * tm * tk * cd
    f_buf = 2 * (feat_rows if feat_resident else tk) * feat_cols * cd
    w_buf = 2 * (feat_cols * w_out + w_out) * 4
    o_buf = 2 * tm * w_out * out_itemsize
    acc = tm * feat_cols * 4
    return a_buf + f_buf + w_buf + o_buf + acc


# --------------------------------------------------------------------------- #
# Layer runner
# --------------------------------------------------------------------------- #
def _run_gcn_layer(a_c, feat, w_f32, b_2d, *, apply_relu, out_dtype,
                   tm, tk, n_pad_m, n_pad_k, vmem_limit_bytes):
    """out = act((A @ feat) @ W + b) with one fused Pallas kernel."""
    f_rows, f_cols = feat.shape
    w_in, w_out = w_f32.shape
    cd = feat.dtype.itemsize
    acd = a_c.dtype.itemsize
    feat_resident = f_rows * f_cols * cd <= _FEAT_RESIDENT_BYTES

    grid = (n_pad_m // tm, n_pad_k // tk)
    kernel = _make_gcn_layer_kernel(tk, feat_resident, apply_relu)

    if feat_resident:
        feat_spec = pl.BlockSpec((f_rows, f_cols), lambda i, k: (0, 0))
    else:
        feat_spec = pl.BlockSpec((tk, f_cols), lambda i, k: (k, 0))

    cost = pl.CostEstimate(
        flops=int(2 * n_pad_m * n_pad_k * f_cols + 2 * n_pad_m * w_in * w_out),
        transcendentals=0,
        bytes_accessed=int(n_pad_m * n_pad_k * acd + f_rows * f_cols * cd
                           + (w_in * w_out + w_out) * 4
                           + n_pad_m * w_out * jnp.dtype(out_dtype).itemsize),
    )

    return pl.pallas_call(
        kernel,
        out_shape=jax.ShapeDtypeStruct((n_pad_m, w_out), out_dtype),
        grid_spec=pltpu.PrefetchScalarGridSpec(
            num_scalar_prefetch=0,
            grid=grid,
            in_specs=[
                pl.BlockSpec((tm, tk), lambda i, k: (i, k)),       # Â tile
                feat_spec,                                         # X or H
                pl.BlockSpec((w_in, w_out), lambda i, k: (0, 0)),  # W (f32)
                pl.BlockSpec((1, w_out), lambda i, k: (0, 0)),     # b (f32)
            ],
            out_specs=pl.BlockSpec((tm, w_out), lambda i, k: (i, 0)),
            scratch_shapes=[pltpu.VMEM((tm, f_cols), jnp.float32)],
        ),
        compiler_params=pltpu.CompilerParams(
            dimension_semantics=("parallel", "arbitrary"),
            vmem_limit_bytes=vmem_limit_bytes,
        ),
        cost_estimate=cost,
    )(a_c, feat, w_f32, b_2d)


# --------------------------------------------------------------------------- #
# Wrapper
# --------------------------------------------------------------------------- #
def normalized_adjacency(edge_index, num_nodes):
    """Dense Â = D^{-1/2}(A + I)D^{-1/2} from edge_index (treated undirected).

    Note: duplicate edges collapse to weight 1 (PyG's gcn_norm scatter-adds);
    results match when edge_index has no duplicates / pre-existing self-loops.
    """
    src, dst = edge_index[0], edge_index[1]
    a = jnp.zeros((num_nodes, num_nodes), jnp.float32)
    a = a.at[dst, src].set(1.0)
    a = a.at[src, dst].set(1.0)
    idx = jnp.arange(num_nodes)
    a = a.at[idx, idx].set(1.0)                       # self-loops
    deg = a.sum(axis=1)
    d_inv_sqrt = jnp.where(deg > 0, 1.0 / jnp.sqrt(deg), 0.0)
    return a * d_inv_sqrt[:, None] * d_inv_sqrt[None, :]


def variational_gcn_encoder_forward(x, edge_index, params, *,
                                    tile_m=None, tile_k=None,
                                    compute_dtype=jnp.bfloat16):
    """Fused VariationalGCNEncoder forward. Returns (mu, logstd)."""
    n, c_in = x.shape
    w1, b1 = params["w1"], params["b1"]
    w_mu, b_mu = params["w_mu"], params["b_mu"]
    w_ls, b_ls = params["w_ls"], params["b_ls"]
    h2 = w1.shape[1]
    c_out = w_mu.shape[1]
    out_dtype = x.dtype
    cd = jnp.dtype(compute_dtype).itemsize

    a_hat = normalized_adjacency(edge_index, n)

    tm, tk, n_pad_m, n_pad_k = _plan_tiles(n, tile_m, tile_k, cd)

    # Per-axis zero padding: rows -> multiple of tm, cols/reduction -> tk.
    a_c = jnp.pad(a_hat.astype(compute_dtype),
                  ((0, n_pad_m - n), (0, n_pad_k - n)))
    x_c = jnp.pad(x.astype(compute_dtype), ((0, n_pad_k - n), (0, 0)))

    # Weights / biases stay f32 (epilogue runs in f32). mu/logstd heads fused
    # into one lane-dense (h2, 2*c_out) weight and a single output slab.
    w1_f = w1.astype(jnp.float32)
    b1_2d = b1.reshape(1, h2).astype(jnp.float32)
    w_cat = jnp.concatenate([w_mu, w_ls], axis=1).astype(jnp.float32)
    b_cat = jnp.concatenate([b_mu, b_ls]).reshape(1, 2 * c_out).astype(jnp.float32)

    out_isz = jnp.dtype(out_dtype).itemsize
    need1 = _vmem_need(tm, tk, n_pad_k, c_in, h2, cd, cd,
                       n_pad_k * c_in * cd <= _FEAT_RESIDENT_BYTES)
    need2 = _vmem_need(tm, tk, n_pad_k, h2, 2 * c_out, cd, out_isz,
                       n_pad_k * h2 * cd <= _FEAT_RESIDENT_BYTES)
    vmem_limit = int(min(96 << 20, max(32 << 20, 2 * max(need1, need2))))

    # ---- kernel 1: H = relu((Â @ X) @ W1 + b1), H kept in compute_dtype ----
    h = _run_gcn_layer(a_c, x_c, w1_f, b1_2d, apply_relu=True,
                       out_dtype=compute_dtype, tm=tm, tk=tk,
                       n_pad_m=n_pad_m, n_pad_k=n_pad_k,
                       vmem_limit_bytes=vmem_limit)

    # H rows live on the row-padded axis; kernel 2 reduces over the col-padded
    # axis. Re-pad if the two differ (padded Â columns are zero, so extra or
    # garbage pad rows of H never contribute).
    if n_pad_k <= n_pad_m:
        h_k = h[:n_pad_k]
    else:
        h_k = jnp.pad(h, ((0, n_pad_k - n_pad_m), (0, 0)))

    # ---- kernel 2: [mu | logstd] = (Â @ H) @ [W_mu|W_ls] + [b_mu|b_ls] ------
    out = _run_gcn_layer(a_c, h_k, w_cat, b_cat, apply_relu=False,
                         out_dtype=out_dtype, tm=tm, tk=tk,
                         n_pad_m=n_pad_m, n_pad_k=n_pad_k,
                         vmem_limit_bytes=vmem_limit)

    return out[:n, :c_out], out[:n, c_out:]


# --------------------------------------------------------------------------- #
# Params / reference
# --------------------------------------------------------------------------- #
def init_params(key, in_channels, out_channels):
    """Glorot weights + small random biases, stored as (fan_in, fan_out)."""
    h2 = 2 * out_channels
    ks = jax.random.split(key, 6)

    def glorot(k, fi, fo):
        s = jnp.sqrt(6.0 / (fi + fo))
        return jax.random.uniform(k, (fi, fo), jnp.float32, -s, s)

    return {
        "w1": glorot(ks[0], in_channels, h2),
        "b1": jax.random.uniform(ks[1], (h2,), jnp.float32, -0.1, 0.1),
        "w_mu": glorot(ks[2], h2, out_channels),
        "b_mu": jax.random.uniform(ks[3], (out_channels,), jnp.float32, -0.1, 0.1),
        "w_ls": glorot(ks[4], h2, out_channels),
        "b_ls": jax.random.uniform(ks[5], (out_channels,), jnp.float32, -0.1, 0.1),
    }


def reference_forward(x, a_hat, p):
    h = jnp.maximum((a_hat @ x) @ p["w1"] + p["b1"], 0.0)
    t = a_hat @ h
    return t @ p["w_mu"] + p["b_mu"], t @ p["w_ls"] + p["b_ls"]


# --------------------------------------------------------------------------- #
# Demo
# --------------------------------------------------------------------------- #
if __name__ == "__main__":
    key = jax.random.PRNGKey(0)
    k_x, k_p = jax.random.split(key)

    N, C_IN, C_OUT = 256, 16, 8                 # small graph: 256 nodes
    # Deterministic undirected ring graph: edges (i, i+1) in both directions.
    idx = jnp.arange(N)
    edge_index = jnp.stack([jnp.concatenate([idx, (idx + 1) % N]),
                            jnp.concatenate([(idx + 1) % N, idx])]).astype(jnp.int32)

    x = jax.random.normal(k_x, (N, C_IN), dtype=jnp.float32)
    params = init_params(k_p, C_IN, C_OUT)

    a_hat = normalized_adjacency(edge_index, N)
    mu_ref, ls_ref = reference_forward(x, a_hat, params)

    # Default fast path: bf16 Â / X / H streams, f32 accumulation + epilogue.
    # tile_m/tile_k = 128 so the demo exercises a (2, 2) grid with the
    # accumulator / pl.when reduction path (not one giant block).
    mu_bf, ls_bf = variational_gcn_encoder_forward(
        x, edge_index, params, tile_m=128, tile_k=128)
    mu_bf, ls_bf = jax.block_until_ready((mu_bf, ls_bf))
    assert mu_bf.shape == (N, C_OUT) and ls_bf.shape == (N, C_OUT)
    assert jnp.allclose(mu_bf, mu_ref, atol=5e-2, rtol=5e-2), "bf16 mu mismatch"
    assert jnp.allclose(ls_bf, ls_ref, atol=5e-2, rtol=5e-2), "bf16 logstd mismatch"

    # f32 path: tight check against the reference.
    mu, logstd = variational_gcn_encoder_forward(
        x, edge_index, params, tile_m=128, tile_k=128,
        compute_dtype=jnp.float32)
    mu, logstd = jax.block_until_ready((mu, logstd))
    assert jnp.allclose(mu, mu_ref, atol=1e-4, rtol=1e-4), "mu mismatch vs reference"
    assert jnp.allclose(logstd, ls_ref, atol=1e-4, rtol=1e-4), "logstd mismatch vs reference"

    print("KERNEL_OK")
</pallas_src>

<mosaic_0001>
module attributes {stable_mosaic.version = 11 : i64} {
  func.func @kernel(%arg0: i32, %arg1: i32, %arg2: memref<128x128xbf16, #tpu.memory_space<vmem>>, %arg3: memref<256x16xbf16, #tpu.memory_space<vmem>>, %arg4: memref<16x16xf32, #tpu.memory_space<vmem>>, %arg5: memref<1x16xf32, #tpu.memory_space<vmem>>, %arg6: memref<128x16xbf16, #tpu.memory_space<vmem>>, %arg7: memref<128x16xf32, #tpu.memory_space<vmem>>) attributes {dimension_semantics = [#tpu.dimension_semantics<parallel>, #tpu.dimension_semantics<arbitrary>], iteration_bounds = array<i64: 2, 2>, scalar_prefetch = 0 : i64, scratch_operands = 1 : i64, tpu.core_type = #tpu.core_type<tc>, window_params = [{transform_indices = @transform_0, window_bounds = array<i64: 128, 128>}, {pipeline_mode = #tpu.pipeline_mode<synchronous>, transform_indices = @transform_1, window_bounds = array<i64: 256, 16>}, {pipeline_mode = #tpu.pipeline_mode<synchronous>, transform_indices = @transform_2, window_bounds = array<i64: 16, 16>}, {pipeline_mode = #tpu.pipeline_mode<synchronous>, transform_indices = @transform_3, window_bounds = array<i64: 1, 16>}, {transform_indices = @transform_4, window_bounds = array<i64: 128, 16>}]} {
    %c0_i32 = arith.constant 0 : i32
    %0 = arith.cmpi eq, %arg1, %c0_i32 : i32
    %1 = arith.extui %0 : i1 to i32
    %c0_i32_0 = arith.constant 0 : i32
    %2 = arith.cmpi ne, %1, %c0_i32_0 : i32
    scf.if %2 {
      %cst_8 = arith.constant 0.000000e+00 : f32
      %15 = vector.broadcast %cst_8 : f32 to vector<128x16xf32>
      %c0_9 = arith.constant 0 : index
      %c0_10 = arith.constant 0 : index
      %16 = vector.load %arg7[%c0_9, %c0_10] : memref<128x16xf32, #tpu.memory_space<vmem>>, vector<128x16xf32>
      tpu.vector_store %arg7[%c0_9, %c0_10], %15 {strides = array<i32>} : memref<128x16xf32, #tpu.memory_space<vmem>>, vector<128x16xf32>,
    } else {
    }
    %c128_i32 = arith.constant 128 : i32
    %3 = arith.muli %arg1, %c128_i32 : i32
    %4 = tpu.assume_multiple %3, 128 : i32
    %5 = arith.index_cast %4 : i32 to index
    %c0 = arith.constant 0 : index
    %6 = vector.load %arg3[%5, %c0] : memref<256x16xbf16, #tpu.memory_space<vmem>>, vector<128x16xbf16>
    %c0_1 = arith.constant 0 : index
    %c0_2 = arith.constant 0 : index
    %7 = vector.load %arg7[%c0_1, %c0_2] : memref<128x16xf32, #tpu.memory_space<vmem>>, vector<128x16xf32>
    %c0_3 = arith.constant 0 : index
    %c0_4 = arith.constant 0 : index
    %8 = vector.load %arg2[%c0_3, %c0_4] : memref<128x128xbf16, #tpu.memory_space<vmem>>, vector<128x128xbf16>
    %cst = arith.constant dense<0.000000e+00> : vector<128x16xf32>
    %9 = tpu.matmul %8, %6, %cst {dimension_numbers = #tpu.dot_dimension_numbers<[1], [0], [0], [1], [0, 0, 1, 1], [], []>} : vector<128x128xbf16>, vector<128x16xbf16>, vector<128x16xf32> -> vector<128x16xf32>
    %10 = arith.addf %7, %9 : vector<128x16xf32>
    %c0_5 = arith.constant 0 : index
    %c0_6 = arith.constant 0 : index
    %11 = vector.load %arg7[%c0_5, %c0_6] : memref<128x16xf32, #tpu.memory_space<vmem>>, vector<128x16xf32>
    tpu.vector_store %arg7[%c0_5, %c0_6], %10 {strides = array<i32>} : memref<128x16xf32, #tpu.memory_space<vmem>>, vector<128x16xf32>,
    %c1_i32 = arith.constant 1 : i32
    %12 = arith.cmpi eq, %arg1, %c1_i32 : i32
    %13 = arith.extui %12 : i1 to i32
    %c0_i32_7 = arith.constant 0 : i32
    %14 = arith.cmpi ne, %13, %c0_i32_7 : i32
    scf.if %14 {
      %c0_8 = arith.constant 0 : index
      %c0_9 = arith.constant 0 : index
      %15 = vector.load %arg7[%c0_8, %c0_9] : memref<128x16xf32, #tpu.memory_space<vmem>>, vector<128x16xf32>
      %c0_10 = arith.constant 0 : index
      %c0_11 = arith.constant 0 : index
      %16 = vector.load %arg4[%c0_10, %c0_11] : memref<16x16xf32, #tpu.memory_space<vmem>>, vector<16x16xf32>
      %cst_12 = arith.constant dense<0.000000e+00> : vector<128x16xf32>
      %17 = tpu.matmul %15, %16, %cst_12 {dimension_numbers = #tpu.dot_dimension_numbers<[1], [0], [0], [1], [0, 0, 1, 1], [], []>} : vector<128x16xf32>, vector<16x16xf32>, vector<128x16xf32> -> vector<128x16xf32>
      %c0_13 = arith.constant 0 : index
      %c0_14 = arith.constant 0 : index
      %18 = vector.load %arg5[%c0_13, %c0_14] : memref<1x16xf32, #tpu.memory_space<vmem>>, vector<1x16xf32>
      %19 = vector.broadcast %18 : vector<1x16xf32> to vector<128x16xf32>
      %20 = arith.addf %17, %19 : vector<128x16xf32>
      %cst_15 = arith.constant 0.000000e+00 : f32
      %21 = vector.broadcast %cst_15 : f32 to vector<128x16xf32>
      %22 = arith.maximumf %20, %21 : vector<128x16xf32>
      %23 = arith.truncf %22 : vector<128x16xf32> to vector<128x16xbf16>
      %c0_16 = arith.constant 0 : index
      %c0_17 = arith.constant 0 : index
      %24 = vector.load %arg6[%c0_16, %c0_17] : memref<128x16xbf16, #tpu.memory_space<vmem>>, vector<128x16xbf16>
      tpu.vector_store %arg6[%c0_16, %c0_17], %23 {strides = array<i32>} : memref<128x16xbf16, #tpu.memory_space<vmem>>, vector<128x16xbf16>,
    } else {
    }
    return
  }
  func.func @transform_0(%arg0: i32, %arg1: i32) -> (i32, i32) {
    %c0_i32 = arith.constant 0 : i32
    return %arg0, %arg1 : i32, i32
  }
  func.func @transform_1(%arg0: i32, %arg1: i32) -> (i32, i32) {
    %c0_i32 = arith.constant 0 : i32
    %c0_i32_0 = arith.constant 0 : i32
    %c0_i32_1 = arith.constant 0 : i32
    return %c0_i32, %c0_i32_0 : i32, i32
  }
  func.func @transform_2(%arg0: i32, %arg1: i32) -> (i32, i32) {
    %c0_i32 = arith.constant 0 : i32
    %c0_i32_0 = arith.constant 0 : i32
    %c0_i32_1 = arith.constant 0 : i32
    return %c0_i32, %c0_i32_0 : i32, i32
  }
  func.func @transform_3(%arg0: i32, %arg1: i32) -> (i32, i32) {
    %c0_i32 = arith.constant 0 : i32
    %c0_i32_0 = arith.constant 0 : i32
    %c0_i32_1 = arith.constant 0 : i32
    return %c0_i32, %c0_i32_0 : i32, i32
  }
  func.func @transform_4(%arg0: i32, %arg1: i32) -> (i32, i32) {
    %c0_i32 = arith.constant 0 : i32
    %c0_i32_0 = arith.constant 0 : i32
    return %arg0, %c0_i32 : i32, i32
  }
}

</mosaic_0001>

<bundles_post_ra>
// kernel: tpu_custom_call.1
= control target key start
LH: loop header
LB: loop body
LE: loop exit
PB: predicated region body
PF: predicated region fallthrough
CT: control target
= control target key end

     0   :  { %9 = vsyncpa [#allocation4], 0  ;;  %s1356_s0 = inlined_call_operand.hbm [shape: bf16[256,256], index: 0, kind: input, shape index: {}]   ;;  %s1357_s1 = inlined_call_operand.vmem [shape: bf16[256,16], index: 1, kind: input, shape index: {}]   ;;  %s1358_s2 = inlined_call_operand.vmem [shape: f32[16,16], index: 2, kind: input, shape index: {}]   ;;  %s1359_s3 = inlined_call_operand.vmem [shape: f32[1,16], index: 3, kind: input, shape index: {}]   ;;  %s1360_s4 = inlined_call_operand.vmem [shape: bf16[256,16], index: 4, kind: output, shape index: {}]  }
   0x1   :  { %11 = vsyncpa [#allocation4 + $0x1], 0  ;;  %s1109_s15 = smov 0   ;;  %s1111_s16 = smov 0  }
   0x2   :  { %s1113_s17 = smov 0   ;;  %s1115_s18 = smov 0  }
   0x3   :  { %s1117_s19 = smov 0   ;;  %s1119_s20 = smov 0  }
   0x4   :  { %s1121_s21 = smov 0   ;;  %s1123_s22 = smov 0  }
   0x5 LB: > { %s761_s23 = sadd.s32 4294967295, %s1078_s22   ;;  %s26_s24 = sadd.s32 1, %s1070_s20  ;;  %s1078_s22 = sphi %s1123_s22, %s17_s22   ;;  %s1074_s21 = sphi %s1121_s21, %s1372_s21   ;;  %s1070_s20 = sphi %s1119_s20, %s1371_s20   ;;  %s1066_s19 = sphi %s1117_s19, %s1370_s19   ;;  %s1062_s18 = sphi %s1115_s18, %s1369_s18   ;;  %s1058_s17 = sphi %s1113_s17, %s1368_s17   ;;  %s1054_s16 = sphi %s1111_s16, %s1367_s16   ;;  %s1050_s15 = sphi %s1109_s15, %s1366_s15  }
   0x6   : > { %p27_p0 = scmp.ge.s32.totalorder %s26_s24, 2  ;;  %s29_s25 = sadd.s32 1, %s1074_s21 }
   0x7   : > { %s38_s26 = sadd.s32 1, %s1058_s17  ;;  %p45_p1 = scmp.ne.s32.totalorder %s1058_s17, %s1054_s16 }
   0x8   : > { %s1374_s24 = smov (%p27_p0, %s26_s24), 0  ;;  %s1376_s25 = smov (!%p27_p0, %s29_s25), %s1074_s21 }
   0x9   : > { %s34_s27 = ssub.s32 %s1070_s20, %s1374_s24  ;;  %p46_p2 = scmp.eq.s32.totalorder %s1078_s22, 0 }
   0xa   : > { %p31_p3 = scmp.ge.s32.totalorder %s1376_s25, 2  ;;  %p51_p4 = scmp.ne.s32.totalorder %s1054_s16, %s1050_s15 }
   0xb   : > { %p1160_p5 = por %p46_p2, %p45_p1  ;;  %p52_p6 = scmp.eq.s32.totalorder %s761_s23, 0 }
   0xc   : > { %s1378_s25 = smov (%p31_p3, %s1376_s25), 0  ;;  %p912_p8 = scmp.lt.s32.totalorder %s1078_s22, 4 }
   0xd   : > { %1363 = sst [smem:[#allocation6_spill]] %s1378_s25  ;;  %p1166_p7 = por %p52_p6, %p51_p4 }
   0xe   : > { %s33_s30 = ssub.s32 %s1074_s21, %s1378_s25  ;;  %s173_s6 = sand.u32 1, %s1058_s17  }
   0xf   : > { %s35_s5 = sor.u32 %s34_s27, %s33_s30  ;;  %s765_s7 = sshll.u32 %s173_s6, 6 }
  0x10   : > { %p36_p9 = scmp.eq.s32.totalorder %s35_s5, 0  ;;  %s859_s8 = sshll.u32 %s1074_s21, 5 }
  0x11   : > { %s182_s10 = sadd.s32 %s1070_s20, %s859_s8  ;;  %s177_s12 = scalar_lea.vmem [#allocation3], %s765_s7 }
  0x12   : > { %s1176_s9 = scalar_select %p36_p9, %s1058_s17, %s38_s26  }
  0x13   : > { %s768_s11 = sshll.u32 %s182_s10, 2  ;;  %s187_s13 = sshll.u32 %s177_s12, 4  ;;  %s188_s13 = int_to_ptr.vmem [resolvable:$true] %s187_s13 }
  0x14   : > { %s184_s23 = scalar_lea.hbm %s1356_s0, %s768_s11  ;;  %p909_p10 = pnand %p912_p8, %p1160_p5 }
  0x15   : > { %s185_s25 = sshll.u32 %s184_s23, 4  ;;  %p769_p11 = scmp.ge.s32.totalorder %s1078_s22, 1  ;;  %s186_s25 = int_to_ptr.hbm [resolvable:$true] %s185_s25 }
  0x16   : > { %s174_s27 = scalar_lea.sflag [#allocation4], %s173_s6  ;;  %s1080_s30 = smov 128  }
  0x17   : > { %s1081_s26 = smov 64   ;;  %s1082_s5 = smov 4  }
  0x18   : > { %911 = dma.hbm_to_vmem [thread:$0]  (!%p909_p10), %s186_s25, 1024, %s188_s13, %s174_s27, %s1080_s30, %s1081_s26, %s1082_s5  }
  0x19   : > { %p195_p12 = scmp.lt.s32.totalorder %s1078_s22, 5 }
  0x1b   : > { %p196_p13 = pnand %p769_p11, %p195_p12 }
  0x1c   : > { %s201_s7 = sand.u32 (!%p196_p13), 1, %s1054_s16  }
  0x1d   : > { %199 = sbr.rel (%p196_p13) target bundleno = 424 (0x1a8), region = 36  ;;  %s770_s8 = sshll.u32 (!%p196_p13), %s201_s7, 6 }
  0x1e   : > { %s202_s10 = scalar_lea.sflag (!%p196_p13), [#allocation4], %s201_s7  ;;  %s1189_s11 = scalar_lea.vmem (!%p196_p13), [#allocation3], %s770_s8 }
  0x22   : > { %1045 = dma.done.wait (%p1166_p7), %s202_s10, 1024  }
  0x23   : > { %1047 = vsyncadd (%p1166_p7), %s202_s10, 4294966272  ;;  %s771_s28 = sshll.u32 %s1066_s19, 4  ;;  %p773_p1 = scmp.ne.s32.totalorder %s1062_s18, 0 }
  0x24   : > { %p233_p0 = scmp.lt.s32.totalorder %s771_s28, 31 }
  0x25   : > { %241 = sbr.rel (%p773_p1) target bundleno = 59 (0x3b), region = 44 }
  0x26   : > { %s1380_s28 = smov (!%p233_p0, %s771_s28), 31 }
  0x27   : > { %s772_s25 = sshll.u32 %s1380_s28, 2 }
  0x28   : > { %s1199_s13 = scalar_lea.vmem %s1360_s4, %s772_s25 }
  0x2a   : > { %vm242_vm0 = vcmask 130048   ;;  %v1083_v0 = vmov 0.0  }
  0x2b   : > { %243 = vst.msk [vmem:[#allocation2] sm:$0xff] %vm242_vm0, %v1083_v0 }
  0x2c   : > { %244 = vst.msk [vmem:[#allocation2 + $0x8] sm:$0xff] %vm242_vm0, %v1083_v0 }
  0x2d   : > { %245 = vst.msk [vmem:[#allocation2 + $0x10] sm:$0xff] %vm242_vm0, %v1083_v0 }
  0x2e   : > { %246 = vst.msk [vmem:[#allocation2 + $0x18] sm:$0xff] %vm242_vm0, %v1083_v0 }
  0x2f   : > { %247 = vst.msk [vmem:[#allocation2 + $0x20] sm:$0xff] %vm242_vm0, %v1083_v0 }
  0x30   : > { %248 = vst.msk [vmem:[#allocation2 + $0x28] sm:$0xff] %vm242_vm0, %v1083_v0 }
  0x31   : > { %249 = vst.msk [vmem:[#allocation2 + $0x30] sm:$0xff] %vm242_vm0, %v1083_v0 }
  0x32   : > { %250 = vst.msk [vmem:[#allocation2 + $0x38] sm:$0xff] %vm242_vm0, %v1083_v0 }
  0x33   : > { %251 = vst.msk [vmem:[#allocation2 + $0x40] sm:$0xff] %vm242_vm0, %v1083_v0 }
  0x34   : > { %252 = vst.msk [vmem:[#allocation2 + $0x48] sm:$0xff] %vm242_vm0, %v1083_v0 }
  0x35   : > { %253 = vst.msk [vmem:[#allocation2 + $0x50] sm:$0xff] %vm242_vm0, %v1083_v0 }
  0x36   : > { %254 = vst.msk [vmem:[#allocation2 + $0x58] sm:$0xff] %vm242_vm0, %v1083_v0 }
  0x37   : > { %255 = vst.msk [vmem:[#allocation2 + $0x60] sm:$0xff] %vm242_vm0, %v1083_v0 }
  0x38   : > { %256 = vst.msk [vmem:[#allocation2 + $0x68] sm:$0xff] %vm242_vm0, %v1083_v0 }
  0x39   : > { %257 = vst.msk [vmem:[#allocation2 + $0x70] sm:$0xff] %vm242_vm0, %v1083_v0 }
  0x3a   : > { %258 = vst.msk [vmem:[#allocation2 + $0x78] sm:$0xff] %vm242_vm0, %v1083_v0 }
  0x3b PF: > { %s774_s19 = sshll.u32 %s1062_s18, 7  ;;  %v868_v9 = vld [vmem:[%s1189_s11] sm:$0xff]  ;;  %v870_v10 = vld [vmem:[%s1189_s11 + $0x10] sm:$0xff]  ;;  %v869_v13 = vld [vmem:[%s1189_s11 + $0x8] sm:$0xff]  ;;  %vm473_vm1 = vcmask 130048   ;;  %p840_p2 = scmp.ne.s32.totalorder %s1062_s18, 1 }
  0x3c   : > { %s260_s29 = sshra.s32 %s774_s19, 3  ;;  %v872_v11 = vld [vmem:[%s1189_s11 + $0x20] sm:$0xff]  ;;  %v874_v12 = vld [vmem:[%s1189_s11 + $0x30] sm:$0xff]  ;;  %v871_v14 = vld [vmem:[%s1189_s11 + $0x18] sm:$0xff] }
  0x3d   : > { %s775_s14 = sshll.u32 %s260_s29, 2  ;;  %v873_v15 = vld [vmem:[%s1189_s11 + $0x28] sm:$0xff]  ;;  %v875_v16 = vld [vmem:[%s1189_s11 + $0x38] sm:$0xff]  ;;  %v280_v17 = vld [vmem:[#allocation2] sm:$0xff] }
  0x3e   : > { %s1222_s27 = scalar_lea.vmem %s1357_s1, %s775_s14  ;;  %v284_v18 = vld [vmem:[#allocation2 + $0x20] sm:$0xff]  ;;  %v281_v25 = vld [vmem:[#allocation2 + $0x8] sm:$0xff]  ;;  %v282_v37 = vld [vmem:[#allocation2 + $0x10] sm:$0xff] }
  0x3f   : > { %v867_v1 = vld [vmem:[%s1222_s27 + $0x38] sm:$0xff]  ;;  %v866_v2 = vld [vmem:[%s1222_s27 + $0x30] sm:$0xff]  ;;  %v865_v3 = vld [vmem:[%s1222_s27 + $0x28] sm:$0xff] }
  0x40   : > { %408 = vmatpush.bf16.msra.mxu0 %v867_v1  ;;  %876 = vmatpush.bf16.msra.mxu1 %v867_v1  ;;  %v864_v4 = vld [vmem:[%s1222_s27 + $0x20] sm:$0xff]  ;;  %v863_v5 = vld [vmem:[%s1222_s27 + $0x18] sm:$0xff]  ;;  %v862_v6 = vld [vmem:[%s1222_s27 + $0x10] sm:$0xff] }
  0x41   : > { %877 = vmatpush.bf16.msra.mxu2 %v867_v1  ;;  %878 = vmatpush.bf16.msra.mxu3 %v867_v1  ;;  %v861_v7 = vld [vmem:[%s1222_s27 + $0x8] sm:$0xff]  ;;  %v860_v8 = vld [vmem:[%s1222_s27] sm:$0xff]  ;;  %v286_v38 = vld [vmem:[#allocation2 + $0x30] sm:$0xff] }
  0x42   : > { %v288_v23 = vld [vmem:[#allocation2 + $0x40] sm:$0xff]  ;;  %v285_v26 = vld [vmem:[#allocation2 + $0x28] sm:$0xff]  ;;  %v290_v47 = vld [vmem:[#allocation2 + $0x50] sm:$0xff] }
  0x43   : > { %v292_v24 = vld [vmem:[#allocation2 + $0x60] sm:$0xff]  ;;  %v289_v35 = vld [vmem:[#allocation2 + $0x48] sm:$0xff]  ;;  %v294_v48 = vld [vmem:[#allocation2 + $0x70] sm:$0xff] }
  0x44   : > { %409 = vmatpush.bf16.msra.mxu0 %v866_v2  ;;  %879 = vmatpush.bf16.msra.mxu1 %v866_v2  ;;  %v293_v36 = vld [vmem:[#allocation2 + $0x68] sm:$0xff]  ;;  %v283_v49 = vld [vmem:[#allocation2 + $0x18] sm:$0xff] }
  0x45   : > { %880 = vmatpush.bf16.msra.mxu2 %v866_v2  ;;  %881 = vmatpush.bf16.msra.mxu3 %v866_v2  ;;  %v287_v50 = vld [vmem:[#allocation2 + $0x38] sm:$0xff] }
  0x46   : > { %v291_v59 = vld [vmem:[#allocation2 + $0x58] sm:$0xff] }
  0x47   : > { %v295_v60 = vld [vmem:[#allocation2 + $0x78] sm:$0xff] }
  0x48   : > { %410 = vmatpush.bf16.msra.mxu0 %v865_v3  ;;  %882 = vmatpush.bf16.msra.mxu1 %v865_v3 }
  0x49   : > { %883 = vmatpush.bf16.msra.mxu2 %v865_v3  ;;  %884 = vmatpush.bf16.msra.mxu3 %v865_v3 }
  0x4c   : > { %411 = vmatpush.bf16.msra.mxu0 %v864_v4  ;;  %885 = vmatpush.bf16.msra.mxu1 %v864_v4 }
  0x4d   : > { %886 = vmatpush.bf16.msra.mxu2 %v864_v4  ;;  %887 = vmatpush.bf16.msra.mxu3 %v864_v4 }
  0x50   : > { %412 = vmatpush.bf16.msra.mxu0 %v863_v5  ;;  %888 = vmatpush.bf16.msra.mxu1 %v863_v5 }
  0x51   : > { %889 = vmatpush.bf16.msra.mxu2 %v863_v5  ;;  %890 = vmatpush.bf16.msra.mxu3 %v863_v5 }
  0x54   : > { %413 = vmatpush.bf16.msra.mxu0 %v862_v6  ;;  %891 = vmatpush.bf16.msra.mxu1 %v862_v6 }
  0x55   : > { %892 = vmatpush.bf16.msra.mxu2 %v862_v6  ;;  %893 = vmatpush.bf16.msra.mxu3 %v862_v6 }
  0x58   : > { %414 = vmatpush.bf16.msra.mxu0 %v861_v7  ;;  %894 = vmatpush.bf16.msra.mxu1 %v861_v7 }
  0x59   : > { %895 = vmatpush.bf16.msra.mxu2 %v861_v7  ;;  %896 = vmatpush.bf16.msra.mxu3 %v861_v7 }
  0x5c   : > { %415 = vmatpush.bf16.msra.mxu0 %v860_v8  ;;  %897 = vmatpush.bf16.msra.mxu1 %v860_v8 }
  0x5d   : > { %898 = vmatpush.bf16.msra.mxu2 %v860_v8  ;;  %899 = vmatpush.bf16.msra.mxu3 %v860_v8 }
  0x5f   : > { %416 = vmatmul.bf16.vlgmr.msra.gmra.mxu0 %v868_v9  ;;  %426 = vmatmul.bf16.vlgmr.msra.gmra.mxu1 %v870_v10 }
  0x60   : > { %436 = vmatmul.bf16.vlgmr.msra.gmra.mxu2 %v872_v11  ;;  %446 = vmatmul.bf16.vlgmr.msra.gmra.mxu3 %v874_v12 }
  0x6f   : > { %421 = vmatmul.bf16.gmra.mxu0 %v869_v13  ;;  %431 = vmatmul.bf16.gmra.mxu1 %v871_v14 }
  0x70   : > { %441 = vmatmul.bf16.gmra.mxu2 %v873_v15  ;;  %451 = vmatmul.bf16.gmra.mxu3 %v875_v16 }
  0xdc   : > { %v417_v19 = vpop.f32.mrf.mxu0  ;;  %v427_v20 = vpop.f32.mrf.mxu1 }
  0xdd   : > { %v457_v21 = vadd.f32 %v417_v19, %v280_v17  ;;  %v461_v22 = vadd.f32 %v427_v20, %v284_v18 }
  0xdf   : > { %474 = vst.msk [vmem:[#allocation2] sm:$0xff] %vm473_vm1, %v457_v21 }
  0xe0   : > { %478 = vst.msk [vmem:[#allocation2 + $0x20] sm:$0xff] %vm473_vm1, %v461_v22 }
  0xe3   : > { %v437_v27 = vpop.f32.mrf.mxu2  ;;  %v447_v28 = vpop.f32.mrf.mxu3 }
  0xe4   : > { %v465_v29 = vadd.f32 %v437_v27, %v288_v23  ;;  %v469_v30 = vadd.f32 %v447_v28, %v292_v24  ;;  %v419_v31 = vpop.f32.mrf.mxu0  ;;  %v429_v32 = vpop.f32.mrf.mxu1 }
  0xe5   : > { %v458_v33 = vadd.f32 %v419_v31, %v281_v25  ;;  %v462_v34 = vadd.f32 %v429_v32, %v285_v26 }
  0xe6   : > { %482 = vst.msk [vmem:[#allocation2 + $0x40] sm:$0xff] %vm473_vm1, %v465_v29 }
  0xe7   : > { %486 = vst.msk [vmem:[#allocation2 + $0x60] sm:$0xff] %vm473_vm1, %v469_v30 }
  0xe8   : > { %475 = vst.msk [vmem:[#allocation2 + $0x8] sm:$0xff] %vm473_vm1, %v458_v33 }
  0xe9   : > { %479 = vst.msk [vmem:[#allocation2 + $0x28] sm:$0xff] %vm473_vm1, %v462_v34 }
  0xeb   : > { %v439_v39 = vpop.f32.mrf.mxu2  ;;  %v449_v40 = vpop.f32.mrf.mxu3 }
  0xec   : > { %v466_v41 = vadd.f32 %v439_v39, %v289_v35  ;;  %v470_v42 = vadd.f32 %v449_v40, %v293_v36  ;;  %v422_v43 = vpop.f32.mrf.mxu0  ;;  %v432_v44 = vpop.f32.mrf.mxu1 }
  0xed   : > { %v459_v45 = vadd.f32 %v422_v43, %v282_v37  ;;  %v463_v46 = vadd.f32 %v432_v44, %v286_v38 }
  0xee   : > { %483 = vst.msk [vmem:[#allocation2 + $0x48] sm:$0xff] %vm473_vm1, %v466_v41 }
  0xef   : > { %487 = vst.msk [vmem:[#allocation2 + $0x68] sm:$0xff] %vm473_vm1, %v470_v42 }
  0xf0   : > { %476 = vst.msk [vmem:[#allocation2 + $0x10] sm:$0xff] %vm473_vm1, %v459_v45 }
  0xf1   : > { %480 = vst.msk [vmem:[#allocation2 + $0x30] sm:$0xff] %vm473_vm1, %v463_v46 }
  0xf3   : > { %v442_v51 = vpop.f32.mrf.mxu2  ;;  %v452_v52 = vpop.f32.mrf.mxu3 }
  0xf4   : > { %v467_v53 = vadd.f32 %v442_v51, %v290_v47  ;;  %v471_v54 = vadd.f32 %v452_v52, %v294_v48  ;;  %v424_v55 = vpop.f32.mrf.mxu0  ;;  %v434_v56 = vpop.f32.mrf.mxu1 }
  0xf5   : > { %v460_v57 = vadd.f32 %v424_v55, %v283_v49  ;;  %v464_v58 = vadd.f32 %v434_v56, %v287_v50 }
  0xf6   : > { %484 = vst.msk [vmem:[#allocation2 + $0x50] sm:$0xff] %vm473_vm1, %v467_v53 }
  0xf7   : > { %488 = vst.msk [vmem:[#allocation2 + $0x70] sm:$0xff] %vm473_vm1, %v471_v54 }
  0xf8   : > { %477 = vst.msk [vmem:[#allocation2 + $0x18] sm:$0xff] %vm473_vm1, %v460_v57 }
  0xf9   : > { %481 = vst.msk [vmem:[#allocation2 + $0x38] sm:$0xff] %vm473_vm1, %v464_v58 }
  0xfb   : > { %v444_v61 = vpop.f32.mrf.mxu2  ;;  %v454_v62 = vpop.f32.mrf.mxu3  ;;  %493 = sbr.rel (%p840_p2) target bundleno = 424 (0x1a8), region = 48 }
  0xfc   : > { %v468_v63 = vadd.f32 %v444_v61, %v291_v59  ;;  %v472_v0 = vadd.f32 %v454_v62, %v295_v60 }
  0xfe   : > { %485 = vst.msk [vmem:[#allocation2 + $0x58] sm:$0xff] %vm473_vm1, %v468_v63 }
  0xff   : > { %489 = vst.msk [vmem:[#allocation2 + $0x78] sm:$0xff] %vm473_vm1, %v472_v0 }
 0x100   : > { %v511_v1 = vld [vmem:[%s1358_s2 + $0x8] sm:$0xff]  ;;  %v510_v2 = vld [vmem:[%s1358_s2] sm:$0xff]  ;;  %v504_v11 = vld [vmem:[#allocation2 + $0x50] sm:$0xff]  ;;  %vm661_vm2 = vcmask 125952  }
 0x101   : > { %901 = vmatpush.msra.mxu2 %v511_v1  ;;  %902 = vmatpush.msra.mxu3 %v511_v1  ;;  %v502_v3 = vld [vmem:[#allocation2 + $0x40] sm:$0xff]  ;;  %v503_v7 = vld [vmem:[#allocation2 + $0x48] sm:$0xff]  ;;  %v508_v12 = vld [vmem:[#allocation2 + $0x70] sm:$0xff] }
 0x102   : > { %v506_v4 = vld [vmem:[#allocation2 + $0x60] sm:$0xff]  ;;  %578 = vmatpush.msra.mxu0 %v511_v1  ;;  %900 = vmatpush.msra.mxu1 %v511_v1  ;;  %v507_v8 = vld [vmem:[#allocation2 + $0x68] sm:$0xff]  ;;  %v496_v13 = vld [vmem:[#allocation2 + $0x10] sm:$0xff] }
 0x103   : > { %904 = vmatpush.msra.mxu2 %v510_v2  ;;  %905 = vmatpush.msra.mxu3 %v510_v2  ;;  %v494_v5 = vld [vmem:[#allocation2] sm:$0xff]  ;;  %v495_v9 = vld [vmem:[#allocation2 + $0x8] sm:$0xff]  ;;  %v500_v14 = vld [vmem:[#allocation2 + $0x30] sm:$0xff] }
 0x104   : > { %v498_v6 = vld [vmem:[#allocation2 + $0x20] sm:$0xff]  ;;  %849 = vmatmul.msk.f32.vlgmr.msra.gmra.mxu2 %vm473_vm1, %v502_v3  ;;  %853 = vmatmul.msk.f32.vlgmr.msra.gmra.mxu3 %vm473_vm1, %v506_v4  ;;  %v499_v10 = vld [vmem:[#allocation2 + $0x28] sm:$0xff]  ;;  %v497_v17 = vld [vmem:[#allocation2 + $0x18] sm:$0xff] }
 0x105   : > { %579 = vmatpush.msra.mxu0 %v510_v2  ;;  %903 = vmatpush.msra.mxu1 %v510_v2  ;;  %v505_v15 = vld [vmem:[#allocation2 + $0x58] sm:$0xff]  ;;  %v1282_v19 = vld [vmem:[%s1359_s3] ss:$0 sm:$0xff] }
 0x106   : > { %841 = vmatmul.msk.f32.vlgmr.msra.gmra.mxu0 %vm473_vm1, %v494_v5  ;;  %845 = vmatmul.msk.f32.vlgmr.msra.gmra.mxu1 %vm473_vm1, %v498_v6  ;;  %v509_v16 = vld [vmem:[#allocation2 + $0x78] sm:$0xff] }
 0x107   : > { %v501_v18 = vld [vmem:[#allocation2 + $0x38] sm:$0xff] }
 0x10c   : > { %850 = vmatmul.msk.f32.gmra.mxu2 %vm473_vm1, %v503_v7  ;;  %854 = vmatmul.msk.f32.gmra.mxu3 %vm473_vm1, %v507_v8 }
 0x10e   : > { %842 = vmatmul.msk.f32.gmra.mxu0 %vm473_vm1, %v495_v9  ;;  %846 = vmatmul.msk.f32.gmra.mxu1 %vm473_vm1, %v499_v10 }
 0x114   : > { %851 = vmatmul.msk.f32.gmra.mxu2 %vm473_vm1, %v504_v11  ;;  %855 = vmatmul.msk.f32.gmra.mxu3 %vm473_vm1, %v508_v12 }
 0x116   : > { %843 = vmatmul.msk.f32.gmra.mxu0 %vm473_vm1, %v496_v13  ;;  %847 = vmatmul.msk.f32.gmra.mxu1 %vm473_vm1, %v500_v14 }
 0x11c   : > { %852 = vmatmul.msk.f32.gmra.mxu2 %vm473_vm1, %v505_v15  ;;  %856 = vmatmul.msk.f32.gmra.mxu3 %vm473_vm1, %v509_v16 }
 0x11e   : > { %844 = vmatmul.msk.f32.gmra.mxu0 %vm473_vm1, %v497_v17  ;;  %848 = vmatmul.msk.f32.gmra.mxu1 %vm473_vm1, %v501_v18 }
 0x183   : > { %v581_v20 = vpop.f32.mrf.mxu0  ;;  %v593_v21 = vpop.f32.mrf.mxu1 }
 0x184   : > { %v582_v22 = vadd.f32 %v1282_v19, %v581_v20  ;;  %v594_v23 = vadd.f32 %v1282_v19, %v593_v21 }
 0x186   : > { %v629_v24 = vmax.f32 %v582_v22, 0.0  ;;  %v633_v25 = vmax.f32 %v594_v23, 0.0 }
 0x187   : > { %v605_v26 = vpop.f32.mrf.mxu2  ;;  %v617_v27 = vpop.f32.mrf.mxu3 }
 0x188   : > { %v645_v28 = vpack.c.bf16 %v629_v24, %v629_v24  ;;  %v649_v29 = vpack.c.bf16 %v633_v25, %v633_v25  ;;  %v606_v30 = vadd.f32 %v1282_v19, %v605_v26  ;;  %v618_v31 = vadd.f32 %v1282_v19, %v617_v27 }
 0x18a   : > { %662 = vst.msk [vmem:[%s1199_s13] sm:$0xf] %vm661_vm2, %v645_v28  ;;  %v637_v32 = vmax.f32 %v606_v30, 0.0  ;;  %v641_v33 = vmax.f32 %v618_v31, 0.0 }
 0x18b   : > { %666 = vst.msk [vmem:[%s1199_s13 + $0x10] sm:$0xf] %vm661_vm2, %v649_v29  ;;  %v584_v34 = vpop.f32.mrf.mxu0  ;;  %v596_v35 = vpop.f32.mrf.mxu1 }
 0x18c   : > { %v653_v36 = vpack.c.bf16 %v637_v32, %v637_v32  ;;  %v657_v37 = vpack.c.bf16 %v641_v33, %v641_v33  ;;  %v585_v38 = vadd.f32 %v1282_v19, %v584_v34  ;;  %v597_v39 = vadd.f32 %v1282_v19, %v596_v35 }
 0x18e   : > { %670 = vst.msk [vmem:[%s1199_s13 + $0x20] sm:$0xf] %vm661_vm2, %v653_v36  ;;  %v630_v40 = vmax.f32 %v585_v38, 0.0  ;;  %v634_v41 = vmax.f32 %v597_v39, 0.0 }
 0x18f   : > { %674 = vst.msk [vmem:[%s1199_s13 + $0x30] sm:$0xf] %vm661_vm2, %v657_v37  ;;  %v608_v42 = vpop.f32.mrf.mxu2  ;;  %v620_v43 = vpop.f32.mrf.mxu3 }
 0x190   : > { %v646_v44 = vpack.c.bf16 %v630_v40, %v630_v40  ;;  %v650_v45 = vpack.c.bf16 %v634_v41, %v634_v41  ;;  %v609_v46 = vadd.f32 %v1282_v19, %v608_v42  ;;  %v621_v47 = vadd.f32 %v1282_v19, %v620_v43 }
 0x192   : > { %663 = vst.msk [vmem:[%s1199_s13 + $0x4] sm:$0xf] %vm661_vm2, %v646_v44  ;;  %v638_v48 = vmax.f32 %v609_v46, 0.0  ;;  %v642_v49 = vmax.f32 %v621_v47, 0.0 }
 0x193   : > { %667 = vst.msk [vmem:[%s1199_s13 + $0x14] sm:$0xf] %vm661_vm2, %v650_v45  ;;  %v587_v50 = vpop.f32.mrf.mxu0  ;;  %v599_v51 = vpop.f32.mrf.mxu1 }
 0x194   : > { %v654_v52 = vpack.c.bf16 %v638_v48, %v638_v48  ;;  %v658_v53 = vpack.c.bf16 %v642_v49, %v642_v49  ;;  %v588_v54 = vadd.f32 %v1282_v19, %v587_v50  ;;  %v600_v55 = vadd.f32 %v1282_v19, %v599_v51 }
 0x196   : > { %671 = vst.msk [vmem:[%s1199_s13 + $0x24] sm:$0xf] %vm661_vm2, %v654_v52  ;;  %v631_v56 = vmax.f32 %v588_v54, 0.0  ;;  %v635_v57 = vmax.f32 %v600_v55, 0.0 }
 0x197   : > { %675 = vst.msk [vmem:[%s1199_s13 + $0x34] sm:$0xf] %vm661_vm2, %v658_v53  ;;  %v611_v58 = vpop.f32.mrf.mxu2  ;;  %v623_v59 = vpop.f32.mrf.mxu3 }
 0x198   : > { %v647_v60 = vpack.c.bf16 %v631_v56, %v631_v56  ;;  %v651_v61 = vpack.c.bf16 %v635_v57, %v635_v57  ;;  %v612_v62 = vadd.f32 %v1282_v19, %v611_v58  ;;  %v624_v63 = vadd.f32 %v1282_v19, %v623_v59 }
 0x19a   : > { %664 = vst.msk [vmem:[%s1199_s13 + $0x8] sm:$0xf] %vm661_vm2, %v647_v60  ;;  %v639_v0 = vmax.f32 %v612_v62, 0.0  ;;  %v643_v1 = vmax.f32 %v624_v63, 0.0 }
 0x19b   : > { %668 = vst.msk [vmem:[%s1199_s13 + $0x18] sm:$0xf] %vm661_vm2, %v651_v61  ;;  %v590_v2 = vpop.f32.mrf.mxu0  ;;  %v602_v3 = vpop.f32.mrf.mxu1 }
 0x19c   : > { %v655_v4 = vpack.c.bf16 %v639_v0, %v639_v0  ;;  %v659_v5 = vpack.c.bf16 %v643_v1, %v643_v1  ;;  %v591_v6 = vadd.f32 %v1282_v19, %v590_v2  ;;  %v603_v7 = vadd.f32 %v1282_v19, %v602_v3 }
 0x19e   : > { %672 = vst.msk [vmem:[%s1199_s13 + $0x28] sm:$0xf] %vm661_vm2, %v655_v4  ;;  %v632_v8 = vmax.f32 %v591_v6, 0.0  ;;  %v636_v9 = vmax.f32 %v603_v7, 0.0 }
 0x19f   : > { %676 = vst.msk [vmem:[%s1199_s13 + $0x38] sm:$0xf] %vm661_vm2, %v659_v5  ;;  %v614_v10 = vpop.f32.mrf.mxu2  ;;  %v626_v11 = vpop.f32.mrf.mxu3 }
 0x1a0   : > { %v648_v12 = vpack.c.bf16 %v632_v8, %v632_v8  ;;  %v652_v13 = vpack.c.bf16 %v636_v9, %v636_v9  ;;  %v615_v14 = vadd.f32 %v1282_v19, %v614_v10  ;;  %v627_v15 = vadd.f32 %v1282_v19, %v626_v11 }
 0x1a2   : > { %665 = vst.msk [vmem:[%s1199_s13 + $0xc] sm:$0xf] %vm661_vm2, %v648_v12  ;;  %v640_v16 = vmax.f32 %v615_v14, 0.0  ;;  %v644_v17 = vmax.f32 %v627_v15, 0.0 }
 0x1a3   : > { %669 = vst.msk [vmem:[%s1199_s13 + $0x1c] sm:$0xf] %vm661_vm2, %v652_v13 }
 0x1a4   : > { %v656_v18 = vpack.c.bf16 %v640_v16, %v640_v16  ;;  %v660_v20 = vpack.c.bf16 %v644_v17, %v644_v17 }
 0x1a6   : > { %673 = vst.msk [vmem:[%s1199_s13 + $0x2c] sm:$0xf] %vm661_vm2, %v656_v18 }
 0x1a7   : > { %677 = vst.msk [vmem:[%s1199_s13 + $0x3c] sm:$0xf] %vm661_vm2, %v660_v20 }
 0x1a8 PF: > { %s17_s22 = sadd.s32 1, %s1078_s22   ;;  %s1365_s10 = sld [smem:[#allocation6_spill]] }
 0x1a9   : > { %p14_p3 = scmp.ge.s32.totalorder %s17_s22, 6   ;;  %s1366_s15 = smov %s1054_s16 }
 0x1aa   : > { %s1367_s16 = smov %s1058_s17  ;;  %s1368_s17 = smov %s1176_s9 }
 0x1ab   : > { %s1369_s18 = smov %s1070_s20  ;;  %s1370_s19 = smov %s1074_s21 }
 0x1ac   : > { %s1371_s20 = smov %s1374_s24  ;;  %16 = sbr.rel (!%p14_p3) target bundleno = 5 (0x5), region = 85 }
 0x1ae   : > { %s1372_s21 = smov %s1365_s10 }
 0x1b1   :  { %700 = vsyncpa [#allocation4], 1 }
 0x1b2   :  { %702 = vsyncpa [#allocation4 + $0x1], 1 }

</bundles_post_ra>
